<compile_context>
chip_gen: v5e
topology: v5e:2x2
jax: 0.10.0
libtpu: 0.0.40
codegen_flags: <defaults>
</compile_context>

<pallas_src>
import jax
import jax.numpy as jnp
import numpy as np
from jax.experimental import pallas as pl
from jax.experimental.pallas import tpu as pltpu


def _round_up(x, m):
    return ((x + m - 1) // m) * m


# ---------------------------------------------------------------------------
# Pallas kernels
# ---------------------------------------------------------------------------
def _make_conv_kernel(kD, sd):
    def kernel(x_ref, w_ref, o_ref, sum_ref, ssq_ref):
        # x_ref  : (1, Dp, RT, kH*kW*Cin) bf16  -- tap-packed rows, resident across `do`
        # w_ref  : (kD, kH*kW*Cin, CT)    bf16  -- resident across n / row / do steps
        # o_ref  : (1, 1, RT, CT)         bf16  -- written exactly once per step
        # sum/ssq: (1, 1, 1, 1, CT)       f32   -- per-block BN partial statistics
        dd = pl.program_id(3) * sd                       # first depth tap for this do
        acc = jnp.dot(x_ref[0, dd], w_ref[0],
                      preferred_element_type=jnp.float32)
        for a in range(1, kD):                           # short static depth-tap loop
            acc = acc + jnp.dot(x_ref[0, dd + a], w_ref[a],
                                preferred_element_type=jnp.float32)
        o_ref[0, 0] = acc.astype(o_ref.dtype)
        # Padded rows/lanes are exactly zero, so they contribute nothing here.
        sum_ref[0, 0, 0] = jnp.sum(acc, axis=0, keepdims=True)
        ssq_ref[0, 0, 0] = jnp.sum(acc * acc, axis=0, keepdims=True)

    return kernel


def _bn_relu_kernel(x_ref, scale_ref, shift_ref, o_ref):
    # y = max(x * scale + shift, 0); scale/shift are (1, Cp) broadcast over rows.
    x = x_ref[...].astype(jnp.float32)
    o_ref[...] = jnp.maximum(x * scale_ref[...] + shift_ref[...], 0.0)


# ---------------------------------------------------------------------------
# Wrapper: BasicConv3d forward
# ---------------------------------------------------------------------------
def basic_conv3d(x, weight, gamma, beta, stride, padding, eps=1e-3):
    """x: (N, Cin, D, H, W)  weight: (Cout, Cin, kD, kH, kW) -> (N, Cout, Do, Ho, Wo)."""
    N, C, D, H, W = x.shape
    Cout, Cin, kD, kH, kW = weight.shape
    assert C == Cin
    sd, sh, sw = stride
    pd, ph, pw = padding

    Dp, Hp, Wp = D + 2 * pd, H + 2 * ph, W + 2 * pw
    Do = (Dp - kD) // sd + 1
    Ho = (Hp - kH) // sh + 1
    Wo = (Wp - kW) // sw + 1
    HWo = Ho * Wo
    KHW = kH * kW * Cin                       # folded contraction depth per depth tap

    Cp = max(128, _round_up(Cout, 128))       # lane-dense padded output channels
    CT = min(Cp, 256)                         # TODO(synk): use CT=128 on v7x (64 MiB VMEM)
    nCT = Cp // CT

    RT = 256 if HWo >= 256 else _round_up(HWo, 16)      # output row tile
    HWo_pad = _round_up(HWo, RT)
    nR = HWo_pad // RT

    M = N * Do * HWo                          # true BN element count per channel
    M_pad = N * Do * HWo_pad

    # ---- host layout prep (bf16 throughout; one-pass kH*kW tap packing) -----
    # TODO(synk): for production I3D shapes (Cin >= 64, large D/H/W) skip the 9x
    # host pre-pack (K = Cin*kH*kW is already MXU-shaped), fold taps in-kernel,
    # and tile the depth window instead of keeping the full Dp extent resident.
    x_cl = jnp.transpose(
        jnp.pad(x.astype(jnp.bfloat16),
                ((0, 0), (0, 0), (pd, pd), (ph, ph), (pw, pw))),
        (0, 2, 3, 4, 1))                                        # (N, Dp, Hp, Wp, Cin)
    taps = []
    for b in range(kH):
        for c in range(kW):
            taps.append(x_cl[:, :, b:b + (Ho - 1) * sh + 1:sh,
                             c:c + (Wo - 1) * sw + 1:sw, :])    # (N, Dp, Ho, Wo, Cin)
    x_packed = jnp.concatenate(taps, axis=-1).reshape(N, Dp, HWo, KHW)
    if HWo_pad != HWo:
        x_packed = jnp.pad(x_packed, ((0, 0), (0, 0), (0, HWo_pad - HWo), (0, 0)))

    # Weight K order (kD, kH, kW, Cin) matches the LHS packing order above.
    w_t = jnp.transpose(weight.astype(jnp.float32), (2, 3, 4, 1, 0)).reshape(kD, KHW, Cout)
    w_t = jnp.pad(w_t, ((0, 0), (0, 0), (0, Cp - Cout))).astype(jnp.bfloat16)

    conv_kernel = _make_conv_kernel(kD, sd)

    flops = 2 * M_pad * (kD * KHW) * Cp
    bytes_accessed = (x_packed.size * 2 * nCT + w_t.size * 2
                      + M_pad * Cp * 2 + 2 * N * Do * nR * Cp * 4)

    # ---- Conv3d: K-folded taps, resident weights, fused BN partial stats ----
    conv, sums, ssqs = pl.pallas_call(
        conv_kernel,
        out_shape=(
            jax.ShapeDtypeStruct((N, Do, HWo_pad, Cp), jnp.bfloat16),
            jax.ShapeDtypeStruct((N, Do, nR, 1, Cp), jnp.float32),
            jax.ShapeDtypeStruct((N, Do, nR, 1, Cp), jnp.float32),
        ),
        grid=(nCT, N, nR, Do),                # do innermost -> x block stays resident
        in_specs=[
            pl.BlockSpec((1, Dp, RT, KHW), lambda ct, n, r, do: (n, 0, r, 0)),
            pl.BlockSpec((kD, KHW, CT),    lambda ct, n, r, do: (0, 0, ct)),
        ],
        out_specs=(
            pl.BlockSpec((1, 1, RT, CT),    lambda ct, n, r, do: (n, do, r, ct)),
            pl.BlockSpec((1, 1, 1, 1, CT),  lambda ct, n, r, do: (n, do, r, 0, ct)),
            pl.BlockSpec((1, 1, 1, 1, CT),  lambda ct, n, r, do: (n, do, r, 0, ct)),
        ),
        compiler_params=pltpu.CompilerParams(
            dimension_semantics=("parallel", "parallel", "parallel", "arbitrary"),
            vmem_limit_bytes=48 * 1024 * 1024,   # safe on v5e/v6e/v7x for these tiles
        ),
        cost_estimate=pl.CostEstimate(flops=flops, transcendentals=0,
                                      bytes_accessed=bytes_accessed),
    )(x_packed, w_t)

    # ---- BatchNorm3d training-mode statistics (biased variance, eps) --------
    # TODO(synk): running_mean/running_var momentum update is host-side module
    # state (momentum=0.001), not kernel compute.
    mean = jnp.sum(sums, axis=(0, 1, 2, 3)) / M                              # (Cp,)
    var = jnp.maximum(jnp.sum(ssqs, axis=(0, 1, 2, 3)) / M - mean * mean, 0.0)
    gamma_p = jnp.pad(gamma.astype(jnp.float32), (0, Cp - Cout))
    beta_p = jnp.pad(beta.astype(jnp.float32), (0, Cp - Cout))
    scale = gamma_p * jax.lax.rsqrt(var + eps)
    shift = beta_p - mean * scale

    # ---- Fused BN-apply + ReLU: bf16 in, lane-dense tiles, no pad copy ------
    blocks = M_pad // RT
    g = 1
    for d in range(min(blocks, max(1, 2048 // RT)), 0, -1):   # largest divisor <= 2048 rows
        if blocks % d == 0:
            g = d
            break
    bn_rows = g * RT

    conv_flat = conv.reshape(M_pad, Cp)       # contiguous collapse, no data movement
    y = pl.pallas_call(
        _bn_relu_kernel,
        out_shape=jax.ShapeDtypeStruct((M_pad, Cp), jnp.float32),
        grid=(M_pad // bn_rows,),
        in_specs=[
            pl.BlockSpec((bn_rows, Cp), lambda i: (i, 0)),
            pl.BlockSpec((1, Cp), lambda i: (0, 0)),
            pl.BlockSpec((1, Cp), lambda i: (0, 0)),
        ],
        out_specs=pl.BlockSpec((bn_rows, Cp), lambda i: (i, 0)),
        compiler_params=pltpu.CompilerParams(
            dimension_semantics=("parallel",),
            vmem_limit_bytes=48 * 1024 * 1024,
        ),
    )(conv_flat, scale.reshape(1, Cp), shift.reshape(1, Cp))

    y = y.reshape(N, Do, HWo_pad, Cp)[:, :, :HWo, :Cout]
    y = y.reshape(N, Do, Ho, Wo, Cout)
    return jnp.transpose(y, (0, 4, 1, 2, 3))                   # back to NCDHW


# ---------------------------------------------------------------------------
# Pure-JAX reference (for correctness check)
# ---------------------------------------------------------------------------
def _reference(x, weight, gamma, beta, stride, padding, eps=1e-3):
    conv = jax.lax.conv_general_dilated(
        x.astype(jnp.float32), weight.astype(jnp.float32),
        window_strides=stride,
        padding=[(padding[0], padding[0]), (padding[1], padding[1]),
                 (padding[2], padding[2])],
        dimension_numbers=("NCDHW", "OIDHW", "NCDHW"),
    )
    mean = jnp.mean(conv, axis=(0, 2, 3, 4), keepdims=True)
    var = jnp.var(conv, axis=(0, 2, 3, 4), keepdims=True)
    g = gamma.reshape(1, -1, 1, 1, 1)
    b = beta.reshape(1, -1, 1, 1, 1)
    return jnp.maximum((conv - mean) / jnp.sqrt(var + eps) * g + b, 0.0)


if __name__ == "__main__":
    # Small shapes consistent with BasicConv3d(in_planes=4, out_planes=8,
    # kernel_size=3, stride=1, padding=1) on a (N, C, D, H, W) video tensor.
    N, Cin, D, H, W = 2, 4, 8, 16, 16
    Cout, k = 8, 3
    stride = (1, 1, 1)
    padding = (1, 1, 1)

    key = jax.random.PRNGKey(0)
    kx, kw, kg, kb = jax.random.split(key, 4)
    x = jax.random.normal(kx, (N, Cin, D, H, W), dtype=jnp.float32)
    weight = jax.random.normal(kw, (Cout, Cin, k, k, k), dtype=jnp.float32) * 0.1
    gamma = 1.0 + 0.1 * jax.random.normal(kg, (Cout,), dtype=jnp.float32)
    beta = 0.1 * jax.random.normal(kb, (Cout,), dtype=jnp.float32)

    out = basic_conv3d(x, weight, gamma, beta, stride, padding, eps=1e-3)
    out = jax.block_until_ready(out)

    ref = jax.block_until_ready(_reference(x, weight, gamma, beta, stride, padding, eps=1e-3))
    assert out.shape == (N, Cout, D, H, W), out.shape
    np.testing.assert_allclose(np.asarray(out), np.asarray(ref), rtol=2e-2, atol=2e-2)

    print("KERNEL_OK")
</pallas_src>

<mosaic_0001>
module attributes {stable_mosaic.version = 11 : i64} {
  func.func @kernel(%arg0: i32, %arg1: i32, %arg2: i32, %arg3: i32, %arg4: memref<1x10x256x36xbf16, #tpu.memory_space<vmem>>, %arg5: memref<3x36x128xbf16, #tpu.memory_space<vmem>>, %arg6: memref<1x1x256x128xbf16, #tpu.memory_space<vmem>>, %arg7: memref<1x1x1x1x128xf32, #tpu.memory_space<vmem>>, %arg8: memref<1x1x1x1x128xf32, #tpu.memory_space<vmem>>) attributes {dimension_semantics = [#tpu.dimension_semantics<parallel>, #tpu.dimension_semantics<parallel>, #tpu.dimension_semantics<parallel>, #tpu.dimension_semantics<arbitrary>], iteration_bounds = array<i64: 1, 2, 1, 8>, scalar_prefetch = 0 : i64, scratch_operands = 0 : i64, tpu.core_type = #tpu.core_type<tc>, window_params = [{transform_indices = @transform_0, window_bounds = array<i64: 1, 10, 256, 36>}, {transform_indices = @transform_1, window_bounds = array<i64: 3, 36, 128>}, {transform_indices = @transform_2, window_bounds = array<i64: 1, 1, 256, 128>}, {transform_indices = @transform_3, window_bounds = array<i64: 1, 1, 1, 1, 128>}, {transform_indices = @transform_4, window_bounds = array<i64: 1, 1, 1, 1, 128>}]} {
    %c1_i32 = arith.constant 1 : i32
    %0 = arith.muli %arg3, %c1_i32 : i32
    %c0 = arith.constant 0 : index
    %1 = arith.index_cast %0 : i32 to index
    %c0_0 = arith.constant 0 : index
    %c0_1 = arith.constant 0 : index
    %2 = vector.load %arg4[%c0, %1, %c0_0, %c0_1] : memref<1x10x256x36xbf16, #tpu.memory_space<vmem>>, vector<1x1x256x36xbf16>
    %3 = vector.shape_cast %2 : vector<1x1x256x36xbf16> to vector<256x36xbf16>
    %c0_2 = arith.constant 0 : index
    %c0_3 = arith.constant 0 : index
    %c0_4 = arith.constant 0 : index
    %4 = vector.load %arg5[%c0_2, %c0_3, %c0_4] : memref<3x36x128xbf16, #tpu.memory_space<vmem>>, vector<1x36x128xbf16>
    %5 = vector.shape_cast %4 : vector<1x36x128xbf16> to vector<36x128xbf16>
    %cst = arith.constant dense<0.000000e+00> : vector<256x128xf32>
    %6 = tpu.matmul %3, %5, %cst {dimension_numbers = #tpu.dot_dimension_numbers<[1], [0], [0], [1], [0, 0, 1, 1], [], []>} : vector<256x36xbf16>, vector<36x128xbf16>, vector<256x128xf32> -> vector<256x128xf32>
    %c1_i32_5 = arith.constant 1 : i32
    %7 = arith.addi %0, %c1_i32_5 : i32
    %c0_6 = arith.constant 0 : index
    %8 = arith.index_cast %7 : i32 to index
    %c0_7 = arith.constant 0 : index
    %c0_8 = arith.constant 0 : index
    %9 = vector.load %arg4[%c0_6, %8, %c0_7, %c0_8] : memref<1x10x256x36xbf16, #tpu.memory_space<vmem>>, vector<1x1x256x36xbf16>
    %10 = vector.shape_cast %9 : vector<1x1x256x36xbf16> to vector<256x36xbf16>
    %c1 = arith.constant 1 : index
    %c0_9 = arith.constant 0 : index
    %c0_10 = arith.constant 0 : index
    %11 = vector.load %arg5[%c1, %c0_9, %c0_10] : memref<3x36x128xbf16, #tpu.memory_space<vmem>>, vector<1x36x128xbf16>
    %12 = vector.shape_cast %11 : vector<1x36x128xbf16> to vector<36x128xbf16>
    %cst_11 = arith.constant dense<0.000000e+00> : vector<256x128xf32>
    %13 = tpu.matmul %10, %12, %cst_11 {dimension_numbers = #tpu.dot_dimension_numbers<[1], [0], [0], [1], [0, 0, 1, 1], [], []>} : vector<256x36xbf16>, vector<36x128xbf16>, vector<256x128xf32> -> vector<256x128xf32>
    %14 = arith.addf %6, %13 : vector<256x128xf32>
    %c2_i32 = arith.constant 2 : i32
    %15 = arith.addi %0, %c2_i32 : i32
    %c0_12 = arith.constant 0 : index
    %16 = arith.index_cast %15 : i32 to index
    %c0_13 = arith.constant 0 : index
    %c0_14 = arith.constant 0 : index
    %17 = vector.load %arg4[%c0_12, %16, %c0_13, %c0_14] : memref<1x10x256x36xbf16, #tpu.memory_space<vmem>>, vector<1x1x256x36xbf16>
    %18 = vector.shape_cast %17 : vector<1x1x256x36xbf16> to vector<256x36xbf16>
    %c2 = arith.constant 2 : index
    %c0_15 = arith.constant 0 : index
    %c0_16 = arith.constant 0 : index
    %19 = vector.load %arg5[%c2, %c0_15, %c0_16] : memref<3x36x128xbf16, #tpu.memory_space<vmem>>, vector<1x36x128xbf16>
    %20 = vector.shape_cast %19 : vector<1x36x128xbf16> to vector<36x128xbf16>
    %cst_17 = arith.constant dense<0.000000e+00> : vector<256x128xf32>
    %21 = tpu.matmul %18, %20, %cst_17 {dimension_numbers = #tpu.dot_dimension_numbers<[1], [0], [0], [1], [0, 0, 1, 1], [], []>} : vector<256x36xbf16>, vector<36x128xbf16>, vector<256x128xf32> -> vector<256x128xf32>
    %22 = arith.addf %14, %21 : vector<256x128xf32>
    %23 = arith.truncf %22 : vector<256x128xf32> to vector<256x128xbf16>
    %c0_18 = arith.constant 0 : index
    %c0_19 = arith.constant 0 : index
    %c0_20 = arith.constant 0 : index
    %c0_21 = arith.constant 0 : index
    %24 = vector.load %arg6[%c0_18, %c0_19, %c0_20, %c0_21] : memref<1x1x256x128xbf16, #tpu.memory_space<vmem>>, vector<1x1x256x128xbf16>
    %25 = vector.shape_cast %24 : vector<1x1x256x128xbf16> to vector<256x128xbf16>
    %26 = vector.shape_cast %23 : vector<256x128xbf16> to vector<1x1x256x128xbf16>
    tpu.vector_store %arg6[%c0_18, %c0_19, %c0_20, %c0_21], %26 {strides = array<i32>} : memref<1x1x256x128xbf16, #tpu.memory_space<vmem>>, vector<1x1x256x128xbf16>,
    %cst_22 = arith.constant dense<0.000000e+00> : vector<128xf32>
    %27 = vector.multi_reduction <add>, %22, %cst_22 [0] : vector<256x128xf32> to vector<128xf32>
    %28 = vector.shape_cast %27 : vector<128xf32> to vector<1x128xf32>
    %c0_23 = arith.constant 0 : index
    %c0_24 = arith.constant 0 : index
    %c0_25 = arith.constant 0 : index
    %c0_26 = arith.constant 0 : index
    %c0_27 = arith.constant 0 : index
    %29 = vector.load %arg7[%c0_23, %c0_24, %c0_25, %c0_26, %c0_27] : memref<1x1x1x1x128xf32, #tpu.memory_space<vmem>>, vector<1x1x1x1x128xf32>
    %30 = vector.shape_cast %29 : vector<1x1x1x1x128xf32> to vector<1x128xf32>
    %31 = vector.shape_cast %28 : vector<1x128xf32> to vector<1x1x1x1x128xf32>
    tpu.vector_store %arg7[%c0_23, %c0_24, %c0_25, %c0_26, %c0_27], %31 {strides = array<i32>} : memref<1x1x1x1x128xf32, #tpu.memory_space<vmem>>, vector<1x1x1x1x128xf32>,
    %32 = arith.mulf %22, %22 : vector<256x128xf32>
    %cst_28 = arith.constant dense<0.000000e+00> : vector<128xf32>
    %33 = vector.multi_reduction <add>, %32, %cst_28 [0] : vector<256x128xf32> to vector<128xf32>
    %34 = vector.shape_cast %33 : vector<128xf32> to vector<1x128xf32>
    %c0_29 = arith.constant 0 : index
    %c0_30 = arith.constant 0 : index
    %c0_31 = arith.constant 0 : index
    %c0_32 = arith.constant 0 : index
    %c0_33 = arith.constant 0 : index
    %35 = vector.load %arg8[%c0_29, %c0_30, %c0_31, %c0_32, %c0_33] : memref<1x1x1x1x128xf32, #tpu.memory_space<vmem>>, vector<1x1x1x1x128xf32>
    %36 = vector.shape_cast %35 : vector<1x1x1x1x128xf32> to vector<1x128xf32>
    %37 = vector.shape_cast %34 : vector<1x128xf32> to vector<1x1x1x1x128xf32>
    tpu.vector_store %arg8[%c0_29, %c0_30, %c0_31, %c0_32, %c0_33], %37 {strides = array<i32>} : memref<1x1x1x1x128xf32, #tpu.memory_space<vmem>>, vector<1x1x1x1x128xf32>,
    return
  }
  func.func @transform_0(%arg0: i32, %arg1: i32, %arg2: i32, %arg3: i32) -> (i32, i32, i32, i32) {
    %c0_i32 = arith.constant 0 : i32
    %c0_i32_0 = arith.constant 0 : i32
    %c0_i32_1 = arith.constant 0 : i32
    return %arg1, %c0_i32, %arg2, %c0_i32_0 : i32, i32, i32, i32
  }
  func.func @transform_1(%arg0: i32, %arg1: i32, %arg2: i32, %arg3: i32) -> (i32, i32, i32) {
    %c0_i32 = arith.constant 0 : i32
    %c0_i32_0 = arith.constant 0 : i32
    %c0_i32_1 = arith.constant 0 : i32
    return %c0_i32, %c0_i32_0, %arg0 : i32, i32, i32
  }
  func.func @transform_2(%arg0: i32, %arg1: i32, %arg2: i32, %arg3: i32) -> (i32, i32, i32, i32) {
    %c0_i32 = arith.constant 0 : i32
    return %arg1, %arg3, %arg2, %arg0 : i32, i32, i32, i32
  }
  func.func @transform_3(%arg0: i32, %arg1: i32, %arg2: i32, %arg3: i32) -> (i32, i32, i32, i32, i32) {
    %c0_i32 = arith.constant 0 : i32
    %c0_i32_0 = arith.constant 0 : i32
    return %arg1, %arg3, %arg2, %c0_i32, %arg0 : i32, i32, i32, i32, i32
  }
  func.func @transform_4(%arg0: i32, %arg1: i32, %arg2: i32, %arg3: i32) -> (i32, i32, i32, i32, i32) {
    %c0_i32 = arith.constant 0 : i32
    %c0_i32_0 = arith.constant 0 : i32
    return %arg1, %arg3, %arg2, %c0_i32, %arg0 : i32, i32, i32, i32, i32
  }
}

</mosaic_0001>

<bundles_post_ra>
// kernel: tpu_custom_call.1
= control target key start
LH: loop header
LB: loop body
LE: loop exit
PB: predicated region body
PF: predicated region fallthrough
CT: control target
= control target key end

     0   :  { %10 = vsyncpa [#allocation3], 0  ;;  %s2797_s0 = inlined_call_operand.vmem [shape: bf16[2,10,256,36], index: 0, kind: input, shape index: {}]   ;;  %s2798_s1 = inlined_call_operand.vmem [shape: bf16[3,36,128], index: 1, kind: input, shape index: {}]   ;;  %s2799_s2 = inlined_call_operand.hbm [shape: bf16[2,8,256,128], index: 2, kind: output, shape index: {0}]   ;;  %s2800_s3 = inlined_call_operand.hbm [shape: f32[2,8,1,1,128], index: 3, kind: output, shape index: {1}]   ;;  %s2801_s4 = inlined_call_operand.hbm [shape: f32[2,8,1,1,128], index: 4, kind: output, shape index: {2}]  }
   0x1   :  { %12 = vsyncpa [#allocation3 + $0x1], 0 }
   0x2   :  { %13 = vsyncpa [#allocation5], 0 }
   0x3   :  { %15 = vsyncpa [#allocation5 + $0x1], 0  ;;  %s2348_s15 = smov 0   ;;  %s2350_s16 = smov 0  }
   0x4   :  { %s2352_s17 = smov 0   ;;  %s2354_s18 = smov 0  }
   0x5   :  { %s2356_s19 = smov 0   ;;  %s2358_s20 = smov 0  }
   0x6   :  { %s2360_s21 = smov 0   ;;  %s2362_s22 = smov 0  }
   0x7 LB: > { %s2803_s23 = sadd.s32 4294967295, %s2319_s22   ;;  %s2802_s24 = sadd.s32 4294967294, %s2319_s22   ;;  %s2319_s22 = sphi %s2362_s22, %s21_s22   ;;  %s2315_s21 = sphi %s2360_s21, %s2814_s21   ;;  %s2311_s20 = sphi %s2358_s20, %s2813_s20   ;;  %s2307_s19 = sphi %s2356_s19, %s2812_s19   ;;  %s2303_s18 = sphi %s2354_s18, %s2811_s18   ;;  %s2299_s17 = sphi %s2352_s17, %s2810_s17   ;;  %s2295_s16 = sphi %s2350_s16, %s2809_s16   ;;  %s2291_s15 = sphi %s2348_s15, %s2808_s15  }
   0x8   : > { %s36_s25 = sadd.s32 1, %s2311_s20  ;;  %s43_s26 = sadd.s32 1, %s2315_s21 }
   0x9   : > { %p37_p0 = scmp.ge.s32.totalorder %s36_s25, 8  ;;  %p124_p1 = scmp.ne.s32.totalorder %s2299_s17, %s2295_s16 }
   0xa   : > { %p125_p2 = scmp.eq.s32.totalorder %s2803_s23, 15  ;;  %p130_p5 = scmp.ne.s32.totalorder %s2295_s16, %s2291_s15 }
   0xb   : > { %s2816_s25 = smov (%p37_p0, %s36_s25), 0  ;;  %s2818_s26 = smov (!%p37_p0, %s43_s26), %s2315_s21 }
   0xc   : > { %s106_s27 = ssub.s32 %s2311_s20, %s2816_s25  ;;  %p2401_p3 = por %p125_p2, %p124_p1 }
   0xd   : > { %p45_p4 = scmp.ge.s32.totalorder %s2818_s26, 2  ;;  %p131_p6 = scmp.eq.s32.totalorder %s2802_s24, 15 }
   0xe   : > { %p1569_p7 = scmp.ge.s32.totalorder %s2319_s22, 1  ;;  %p233_p9 = scmp.lt.s32.totalorder %s2319_s22, 17 }
   0xf   : > { %s2820_s26 = smov (%p45_p4, %s2818_s26), 0  ;;  %p2412_p8 = por %p131_p6, %p130_p5 }
  0x10   : > { %s105_s30 = ssub.s32 %s2315_s21, %s2820_s26  ;;  %s114_s5 = sadd.s32 1, %s2299_s17 }
  0x11   : > { %s107_s6 = sor.u32 %s106_s27, %s105_s30  ;;  %p234_p10 = pnand %p1569_p7, %p233_p9 }
  0x12   : > { %p112_p11 = scmp.eq.s32.totalorder %s107_s6, 0  ;;  %p276_p12 = scmp.lt.s32.totalorder (!%p234_p10), %s2307_s19, 1 }
  0x13   : > { %237 = sbr.rel (%p234_p10) target bundleno = 406 (0x196), region = 28  ;;  %s2533_s24 = sand.u32 (!%p234_p10), 1, %s2295_s16  }
  0x14   : > { %s2421_s7 = scalar_select %p112_p11, %s2299_s17, %s114_s5  }
  0x15   : > { %s1570_s10 = sshll.u32 (!%p234_p10), %s2533_s24, 7  ;;  %s1915_s12 = sshll.u32 (!%p234_p10), %s2303_s18, 5 }
  0x16   : > { %s2544_s11 = scalar_lea.vmem (!%p234_p10), [#allocation2], %s1570_s10  ;;  %s1327_s10 = scalar_lea.sflag (!%p234_p10), [#allocation3], %s2533_s24 }
  0x18   : > { %v1611_v0 = vld [vmem:[%s2798_s1 + $0x24] sm:$0x3]  ;;  %v330_v1 = vld [vmem:[%s2798_s1 + $0x10] sm:$0x3]  ;;  %v1825_v4 = vld [vmem:[%s2798_s1 + $0x38] sm:$0x3] }
  0x19   : > { %v462_v2 = vunpack.c.l.b16 %v1611_v0  ;;  %v699_v3 = vunpack.c.l.b16 %v330_v1  ;;  %vm517_vm0 = vcmask 1041408   ;;  %v976_v5 = vunpack.c.l.b16 %v1825_v4  ;;  %s277_s14 = scalar_select %p276_p12, %s2307_s19, 1  ;;  %v1958_v12 = vld [vmem:[%s2798_s1 + $0x1c] sm:$0xff]  ;;  %v1940_v13 = vld [vmem:[%s2798_s1 + $0x8] sm:$0xff]  ;;  %v1976_v14 = vld [vmem:[%s2798_s1 + $0x30] sm:$0xff] }
  0x1a   : > { %v1957_v15 = vld [vmem:[%s2798_s1 + $0x14] sm:$0xff]  ;;  %v1939_v16 = vld [vmem:[%s2798_s1] sm:$0xff]  ;;  %v1975_v17 = vld [vmem:[%s2798_s1 + $0x28] sm:$0xff]  ;;  %vm468_vm1 = vcmask 293888  }
  0x1b   : > { %v465_v6 = vpack.c.b16 %v462_v2, %v462_v2  ;;  %v702_v7 = vpack.c.b16 %v699_v3, %v699_v3  ;;  %v979_v8 = vpack.c.b16 %v976_v5, %v976_v5  ;;  %s2081_s27 = smul.u32 1280, %s277_s14  ;;  %s1922_s14 = sshll.u32 %s2303_s18, 7 }
  0x1d   : > { %v519_v9 = vsel %vm517_vm0, %v465_v6, 0  ;;  %v754_v10 = vsel %vm517_vm0, %v702_v7, 0  ;;  %v1031_v11 = vsel %vm517_vm0, %v979_v8, 0  ;;  %s283_s13 = scalar_lea.vmem %s2797_s0, %s2081_s27  ;;  %s1352_s27 = sshll.u32 %s2544_s11, 4  ;;  %s2676_s27 = int_to_ptr.vmem [resolvable:$true] %s1352_s27 }
  0x1e   : > { %526 = vmatpush.bf16.msra.mxu0 %v519_v9  ;;  %2072 = vmatpush.bf16.msra.mxu3 %v519_v9  ;;  %s2450_s5 = scalar_lea.vmem %s283_s13, %s1922_s14  ;;  %s1916_s13 = sshll.u32 %s2307_s19, 8 }
  0x1f   : > { %761 = vmatpush.bf16.msra.mxu1 %v754_v10  ;;  %1038 = vmatpush.bf16.msra.mxu2 %v1031_v11  ;;  %v1941_v18 = vld [vmem:[%s2450_s5 + $0x80] sm:$0xff]  ;;  %v1942_v22 = vld [vmem:[%s2450_s5 + $0x88] sm:$0xff]  ;;  %v1943_v26 = vld [vmem:[%s2450_s5 + $0x90] sm:$0xff]  ;;  %s1349_s14 = sadd.s32 %s1916_s13, %s1915_s12 }
  0x20   : > { %v1953_v19 = vld [vmem:[%s2450_s5 + $0xe0] sm:$0xff]  ;;  %v1954_v23 = vld [vmem:[%s2450_s5 + $0xe8] sm:$0xff]  ;;  %v1955_v27 = vld [vmem:[%s2450_s5 + $0xf0] sm:$0xff]  ;;  %s1917_s30 = sshll.u32 %s1349_s14, 2 }
  0x21   : > { %v1923_v20 = vld [vmem:[%s2450_s5] sm:$0xff]  ;;  %v1924_v24 = vld [vmem:[%s2450_s5 + $0x8] sm:$0xff]  ;;  %v1925_v28 = vld [vmem:[%s2450_s5 + $0x10] sm:$0xff]  ;;  %s1351_s8 = scalar_lea.hbm %s2799_s2, %s1917_s30 }
  0x22   : > { %527 = vmatpush.bf16.msra.mxu0 %v1958_v12  ;;  %2073 = vmatpush.bf16.msra.mxu3 %v1958_v12  ;;  %v1959_v21 = vld [vmem:[%s2450_s5 + $0x100] sm:$0xff]  ;;  %v1960_v25 = vld [vmem:[%s2450_s5 + $0x108] sm:$0xff]  ;;  %v1961_v29 = vld [vmem:[%s2450_s5 + $0x110] sm:$0xff]  ;;  %s1354_s9 = sshll.u32 %s1351_s8, 4  ;;  %s2678_s9 = int_to_ptr.hbm [resolvable:$true] %s1354_s9 }
  0x23   : > { %762 = vmatpush.bf16.msra.mxu1 %v1940_v13  ;;  %1039 = vmatpush.bf16.msra.mxu2 %v1976_v14  ;;  %v1944_v30 = vld [vmem:[%s2450_s5 + $0x98] sm:$0xff]  ;;  %v1945_v34 = vld [vmem:[%s2450_s5 + $0xa0] sm:$0xff]  ;;  %v1946_v38 = vld [vmem:[%s2450_s5 + $0xa8] sm:$0xff]  ;;  %s2179_s12 = sshra.s32 %s2678_s9, 4  ;;  %s2180_s12 = int_to_ptr.hbm [resolvable:$true] %s2179_s12 }
  0x24   : > { %v1956_v31 = vld [vmem:[%s2450_s5 + $0xf8] sm:$0xff]  ;;  %v1935_v35 = vld [vmem:[%s2450_s5 + $0x60] sm:$0xff]  ;;  %v1936_v39 = vld [vmem:[%s2450_s5 + $0x68] sm:$0xff]  ;;  %s2181_s13 = scalar_lea.hbm %s2180_s12, 128  ;;  %p2186_p2 = scmp.lt.s32.totalorder %s2180_s12, %s2799_s2 }
  0x25   : > { %v1926_v32 = vld [vmem:[%s2450_s5 + $0x18] sm:$0xff]  ;;  %v1927_v36 = vld [vmem:[%s2450_s5 + $0x20] sm:$0xff]  ;;  %v1928_v40 = vld [vmem:[%s2450_s5 + $0x28] sm:$0xff]  ;;  %p2182_p13 = scmp.ne.s32.totalorder %s2180_s12, %s2181_s13 }
  0x26   : > { %528 = vmatpush.bf16.msra.mxu0 %v1957_v15  ;;  %2074 = vmatpush.bf16.msra.mxu3 %v1957_v15  ;;  %v1962_v33 = vld [vmem:[%s2450_s5 + $0x118] sm:$0xff]  ;;  %v1963_v37 = vld [vmem:[%s2450_s5 + $0x120] sm:$0xff]  ;;  %v1964_v41 = vld [vmem:[%s2450_s5 + $0x128] sm:$0xff] }
  0x27   : > { %763 = vmatpush.bf16.msra.mxu1 %v1939_v16  ;;  %1040 = vmatpush.bf16.msra.mxu2 %v1975_v17  ;;  %v1947_v42 = vld [vmem:[%s2450_s5 + $0xb0] sm:$0xff]  ;;  %v1948_v46 = vld [vmem:[%s2450_s5 + $0xb8] sm:$0xff]  ;;  %v1949_v50 = vld [vmem:[%s2450_s5 + $0xc0] sm:$0xff]  ;;  %p2183_p0 = pnand %p2182_p13, %p2401_p3 }
  0x28   : > { %v1937_v43 = vld [vmem:[%s2450_s5 + $0x70] sm:$0xff]  ;;  %v1938_v47 = vld [vmem:[%s2450_s5 + $0x78] sm:$0xff]  ;;  %v1971_v51 = vld [vmem:[%s2450_s5 + $0x160] sm:$0xff] }
  0x29   : > { %1684 = vmatmul.msk.bf16.vlgmr.msra.gmra.mxu0 %vm468_vm1, %v1941_v18  ;;  %1696 = vmatmul.msk.bf16.vlgmr.msra.gmra.mxu3 %vm468_vm1, %v1953_v19  ;;  %v1929_v44 = vld [vmem:[%s2450_s5 + $0x30] sm:$0xff]  ;;  %v1930_v48 = vld [vmem:[%s2450_s5 + $0x38] sm:$0xff]  ;;  %v1931_v53 = vld [vmem:[%s2450_s5 + $0x40] sm:$0xff]  ;;  %p2184_p1 = pneg %p2183_p0 }
  0x2a   : > { %2075 = vmatpush.bf16.msrb.mxu3 %v754_v10  ;;  %1772 = vmatmul.msk.bf16.vlgmr.msra.gmra.mxu1 %vm468_vm1, %v1923_v20  ;;  %v1965_v45 = vld [vmem:[%s2450_s5 + $0x130] sm:$0xff]  ;;  %v1966_v49 = vld [vmem:[%s2450_s5 + $0x138] sm:$0xff]  ;;  %v1967_v54 = vld [vmem:[%s2450_s5 + $0x140] sm:$0xff] }
  0x2b   : > { %1898 = vmatmul.msk.bf16.vlgmr.msra.gmra.mxu2 %vm468_vm1, %v1959_v21  ;;  %v1950_v1 = vld [vmem:[%s2450_s5 + $0xc8] sm:$0xff] }
  0x2c   : > { %v1972_v2 = vld [vmem:[%s2450_s5 + $0x168] sm:$0xff] }
  0x2d   : > { %v1932_v5 = vld [vmem:[%s2450_s5 + $0x48] sm:$0xff] }
  0x2e   : > { %2076 = vmatpush.bf16.msrb.mxu3 %v1940_v13  ;;  %v1968_v6 = vld [vmem:[%s2450_s5 + $0x148] sm:$0xff] }
  0x32   : > { %2077 = vmatpush.bf16.msrb.mxu3 %v1939_v16 }
  0x36   : > { %2078 = vmatpush.bf16.msra.mxu3 %v1031_v11 }
  0x39   : > { %1685 = vmatmul.msk.bf16.gmra.mxu0 %vm468_vm1, %v1942_v22  ;;  %1697 = vmatmul.msk.bf16.gmra.mxu3 %vm468_vm1, %v1954_v23 }
  0x3a   : > { %2079 = vmatpush.bf16.msra.mxu3 %v1976_v14  ;;  %1773 = vmatmul.msk.bf16.gmra.mxu1 %vm468_vm1, %v1924_v24 }
  0x3b   : > { %1899 = vmatmul.msk.bf16.gmra.mxu2 %vm468_vm1, %v1960_v25  ;;  %v1951_v25 = vld [vmem:[%s2450_s5 + $0xd0] sm:$0xff] }
  0x3e   : > { %2080 = vmatpush.bf16.msra.mxu3 %v1975_v17 }
  0x49   : > { %1686 = vmatmul.msk.bf16.gmra.mxu0 %vm468_vm1, %v1943_v26  ;;  %1698 = vmatmul.msk.bf16.gmra.mxu3 %vm468_vm1, %v1955_v27  ;;  %v1973_v26 = vld [vmem:[%s2450_s5 + $0x170] sm:$0xff] }
  0x4a   : > { %1774 = vmatmul.msk.bf16.gmra.mxu1 %vm468_vm1, %v1925_v28 }
  0x4b   : > { %1900 = vmatmul.msk.bf16.gmra.mxu2 %vm468_vm1, %v1961_v29  ;;  %v1933_v29 = vld [vmem:[%s2450_s5 + $0x50] sm:$0xff] }
  0x59   : > { %1687 = vmatmul.msk.bf16.gmra.mxu0 %vm468_vm1, %v1944_v30  ;;  %1699 = vmatmul.msk.bf16.gmra.mxu3 %vm468_vm1, %v1956_v31  ;;  %v1969_v30 = vld [vmem:[%s2450_s5 + $0x150] sm:$0xff] }
  0x5a   : > { %1775 = vmatmul.msk.bf16.gmra.mxu1 %vm468_vm1, %v1926_v32 }
  0x5b   : > { %1901 = vmatmul.msk.bf16.gmra.mxu2 %vm468_vm1, %v1962_v33 }
  0x69   : > { %1688 = vmatmul.msk.bf16.gmra.mxu0 %vm468_vm1, %v1945_v34  ;;  %1784 = vmatmul.msk.bf16.vlgmr.msrb.gmra.mxu3 %vm468_vm1, %v1935_v35 }
  0x6a   : > { %1776 = vmatmul.msk.bf16.gmra.mxu1 %vm468_vm1, %v1927_v36 }
  0x6b   : > { %1902 = vmatmul.msk.bf16.gmra.mxu2 %vm468_vm1, %v1963_v37 }
  0x79   : > { %1689 = vmatmul.msk.bf16.gmra.mxu0 %vm468_vm1, %v1946_v38  ;;  %1785 = vmatmul.msk.bf16.gmra.mxu3 %vm468_vm1, %v1936_v39 }
  0x7a   : > { %1777 = vmatmul.msk.bf16.gmra.mxu1 %vm468_vm1, %v1928_v40 }
  0x7b   : > { %1903 = vmatmul.msk.bf16.gmra.mxu2 %vm468_vm1, %v1964_v41 }
  0x89   : > { %1690 = vmatmul.msk.bf16.gmra.mxu0 %vm468_vm1, %v1947_v42  ;;  %1786 = vmatmul.msk.bf16.gmra.mxu3 %vm468_vm1, %v1937_v43 }
  0x8a   : > { %1778 = vmatmul.msk.bf16.gmra.mxu1 %vm468_vm1, %v1929_v44 }
  0x8b   : > { %1904 = vmatmul.msk.bf16.gmra.mxu2 %vm468_vm1, %v1965_v45 }
  0x99   : > { %1691 = vmatmul.msk.bf16.gmra.mxu0 %vm468_vm1, %v1948_v46  ;;  %1787 = vmatmul.msk.bf16.gmra.mxu3 %vm468_vm1, %v1938_v47 }
  0x9a   : > { %1779 = vmatmul.msk.bf16.gmra.mxu1 %vm468_vm1, %v1930_v48  ;;  %v1952_v48 = vld [vmem:[%s2450_s5 + $0xd8] sm:$0xff] }
  0x9b   : > { %1905 = vmatmul.msk.bf16.gmra.mxu2 %vm468_vm1, %v1966_v49  ;;  %v1974_v49 = vld [vmem:[%s2450_s5 + $0x178] sm:$0xff] }
  0xa6   : > { %v530_v52 = vpop.f32.mrf.mxu0 }
  0xa7   : > { %v765_v55 = vpop.f32.mrf.mxu1 }
  0xa8   : > { %v766_v60 = vadd.f32 %v765_v55, %v530_v52  ;;  %v1934_v52 = vld [vmem:[%s2450_s5 + $0x58] sm:$0xff] }
  0xa9   : > { %1692 = vmatmul.msk.bf16.gmra.mxu0 %vm468_vm1, %v1949_v50  ;;  %1910 = vmatmul.msk.bf16.vlgmr.msra.gmra.mxu3 %vm468_vm1, %v1971_v51 }
  0xaa   : > { %1780 = vmatmul.msk.bf16.gmra.mxu1 %vm468_vm1, %v1931_v53  ;;  %v1970_v53 = vld [vmem:[%s2450_s5 + $0x158] sm:$0xff]  ;;  %s2185_s5 = scalar_lea.hbm %s2799_s2, 2048 }
  0xab   : > { %1906 = vmatmul.msk.bf16.gmra.mxu2 %vm468_vm1, %v1967_v54  ;;  %p2187_p4 = scmp.lt.s32.totalorder %s2185_s5, %s2181_s13 }
  0xac   : > { %v2530_v56 = vpop.f32.mrf.mxu3 }
  0xad   : > { %p2188_p5 = por %p2187_p4, %p2186_p2 }
  0xae   : > { %v1042_v57 = vpop.f32.mrf.mxu2  ;;  %v532_v58 = vpop.f32.mrf.mxu0 }
  0xaf   : > { %v767_v59 = vpop.f32.mrf.mxu1  ;;  %v1122_v61 = vadd.f32 %v1042_v57, %v766_v60  ;;  %p2189_p6 = pnand %p2188_p5, %p2184_p1 }
  0xb0   : > { %v768_v62 = vadd.f32 %v767_v59, %v532_v58 }
  0xb1   : > { %v1256_v8 = vmul.f32 %v1122_v61, %v1122_v61 }
  0xb4   : > { %v2535_v63 = vpop.f32.mrf.mxu3 }
  0xb6   : > { %v1044_v0 = vpop.f32.mrf.mxu2  ;;  %v535_v4 = vpop.f32.mrf.mxu0 }
  0xb7   : > { %v1123_v3 = vadd.f32 %v1044_v0, %v768_v62  ;;  %v770_v7 = vpop.f32.mrf.mxu1 }
  0xb8   : > { %v771_v13 = vadd.f32 %v770_v7, %v535_v4 }
  0xb9   : > { %v1980_v9 = vpack.c.bf16 %v1123_v3, %v1122_v61  ;;  %v1218_v10 = vadd.f32 %v1123_v3, %v1122_v61  ;;  %v1257_v11 = vmul.f32 %v1123_v3, %v1123_v3  ;;  %1693 = vmatmul.msk.bf16.gmra.mxu0 %vm468_vm1, %v1950_v1  ;;  %1911 = vmatmul.msk.bf16.gmra.mxu3 %vm468_vm1, %v1972_v2 }
  0xba   : > { %1781 = vmatmul.msk.bf16.gmra.mxu1 %vm468_vm1, %v1932_v5 }
  0xbb   : > { %1981 = vst [vmem:[%s2544_s11] sm:$0xff] %v1980_v9   ;;  %v1288_v12 = vadd.f32 %v1257_v11, %v1256_v8  ;;  %1907 = vmatmul.msk.bf16.gmra.mxu2 %vm468_vm1, %v1968_v6 }
  0xbc   : > { %v2549_v14 = vpop.f32.mrf.mxu3 }
  0xbe   : > { %v1047_v15 = vpop.f32.mrf.mxu2  ;;  %v537_v17 = vpop.f32.mrf.mxu0 }
  0xbf   : > { %v1124_v16 = vadd.f32 %v1047_v15, %v771_v13  ;;  %v772_v18 = vpop.f32.mrf.mxu1 }
  0xc0   : > { %v773_v22 = vadd.f32 %v772_v18, %v537_v17 }
  0xc1   : > { %v1219_v19 = vadd.f32 %v1218_v10, %v1124_v16  ;;  %v1258_v20 = vmul.f32 %v1124_v16, %v1124_v16 }
  0xc3   : > { %v1289_v21 = vadd.f32 %v1288_v12, %v1258_v20 }
  0xc4   : > { %v2551_v23 = vpop.f32.mrf.mxu3 }
  0xc6   : > { %v1049_v24 = vpop.f32.mrf.mxu2  ;;  %v540_v28 = vpop.f32.mrf.mxu0 }
  0xc7   : > { %v1125_v27 = vadd.f32 %v1049_v24, %v773_v22  ;;  %v775_v31 = vpop.f32.mrf.mxu1 }
  0xc8   : > { %v776_v36 = vadd.f32 %v775_v31, %v540_v28 }
  0xc9   : > { %v1985_v32 = vpack.c.bf16 %v1125_v27, %v1124_v16  ;;  %v1220_v33 = vadd.f32 %v1219_v19, %v1125_v27  ;;  %v1259_v34 = vmul.f32 %v1125_v27, %v1125_v27  ;;  %1694 = vmatmul.msk.bf16.gmra.mxu0 %vm468_vm1, %v1951_v25  ;;  %1912 = vmatmul.msk.bf16.gmra.mxu3 %vm468_vm1, %v1973_v26 }
  0xca   : > { %1782 = vmatmul.msk.bf16.gmra.mxu1 %vm468_vm1, %v1933_v29 }
  0xcb   : > { %2057 = vst [vmem:[%s2544_s11 + $0x8] sm:$0xff] %v1985_v32   ;;  %v1290_v35 = vadd.f32 %v1289_v21, %v1259_v34  ;;  %1908 = vmatmul.msk.bf16.gmra.mxu2 %vm468_vm1, %v1969_v30 }
  0xcc   : > { %v2562_v37 = vpop.f32.mrf.mxu3 }
  0xce   : > { %v1052_v38 = vpop.f32.mrf.mxu2  ;;  %v542_v40 = vpop.f32.mrf.mxu0 }
  0xcf   : > { %v1126_v39 = vadd.f32 %v1052_v38, %v776_v36  ;;  %v777_v41 = vpop.f32.mrf.mxu1 }
  0xd0   : > { %v778_v45 = vadd.f32 %v777_v41, %v542_v40 }
  0xd1   : > { %v1221_v42 = vadd.f32 %v1220_v33, %v1126_v39  ;;  %v1260_v43 = vmul.f32 %v1126_v39, %v1126_v39 }
  0xd3   : > { %v1291_v44 = vadd.f32 %v1290_v35, %v1260_v43 }
  0xd4   : > { %v2564_v46 = vpop.f32.mrf.mxu3 }
  0xd6   : > { %v1054_v47 = vpop.f32.mrf.mxu2  ;;  %v545_v51 = vpop.f32.mrf.mxu0 }
  0xd7   : > { %v1127_v50 = vadd.f32 %v1054_v47, %v778_v45  ;;  %v780_v54 = vpop.f32.mrf.mxu1 }
  0xd8   : > { %v781_v60 = vadd.f32 %v780_v54, %v545_v51 }
  0xd9   : > { %v1990_v55 = vpack.c.bf16 %v1127_v50, %v1126_v39  ;;  %v1222_v57 = vadd.f32 %v1221_v42, %v1127_v50  ;;  %v1261_v58 = vmul.f32 %v1127_v50, %v1127_v50  ;;  %1695 = vmatmul.msk.bf16.gmra.mxu0 %vm468_vm1, %v1952_v48  ;;  %1913 = vmatmul.msk.bf16.gmra.mxu3 %vm468_vm1, %v1974_v49 }
  0xda   : > { %1783 = vmatmul.msk.bf16.gmra.mxu1 %vm468_vm1, %v1934_v52 }
  0xdb   : > { %2058 = vst [vmem:[%s2544_s11 + $0x10] sm:$0xff] %v1990_v55   ;;  %v1292_v59 = vadd.f32 %v1291_v44, %v1261_v58  ;;  %1909 = vmatmul.msk.bf16.gmra.mxu2 %vm468_vm1, %v1970_v53 }
  0xdc   : > { %v2575_v61 = vpop.f32.mrf.mxu3 }
  0xde   : > { %v1057_v62 = vpop.f32.mrf.mxu2  ;;  %v547_v1 = vpop.f32.mrf.mxu0 }
  0xdf   : > { %v1128_v0 = vadd.f32 %v1057_v62, %v781_v60  ;;  %v782_v2 = vpop.f32.mrf.mxu1 }
  0xe0   : > { %v783_v6 = vadd.f32 %v782_v2, %v547_v1 }
  0xe1   : > { %v1223_v3 = vadd.f32 %v1222_v57, %v1128_v0  ;;  %v1262_v4 = vmul.f32 %v1128_v0, %v1128_v0 }
  0xe3   : > { %v1293_v5 = vadd.f32 %v1292_v59, %v1262_v4 }
  0xe4   : > { %v2577_v7 = vpop.f32.mrf.mxu3 }
  0xe6   : > { %v1059_v8 = vpop.f32.mrf.mxu2  ;;  %v550_v10 = vpop.f32.mrf.mxu0 }
  0xe7   : > { %v1129_v9 = vadd.f32 %v1059_v8, %v783_v6  ;;  %v785_v11 = vpop.f32.mrf.mxu1 }
  0xe8   : > { %v786_v17 = vadd.f32 %v785_v11, %v550_v10 }
  0xe9   : > { %v1995_v12 = vpack.c.bf16 %v1129_v9, %v1128_v0  ;;  %v1224_v13 = vadd.f32 %v1223_v3, %v1129_v9  ;;  %v1263_v15 = vmul.f32 %v1129_v9, %v1129_v9 }
  0xeb   : > { %2059 = vst [vmem:[%s2544_s11 + $0x18] sm:$0xff] %v1995_v12   ;;  %v1294_v16 = vadd.f32 %v1293_v5, %v1263_v15 }
  0xec   : > { %v825_v18 = vpop.f32.mrf.mxu3 }
  0xed   : > { %v2581_v19 = vadd.f32 %v825_v18, %v2530_v56 }
  0xee   : > { %v1062_v20 = vpop.f32.mrf.mxu2  ;;  %v552_v22 = vpop.f32.mrf.mxu0 }
  0xef   : > { %v1130_v21 = vadd.f32 %v1062_v20, %v786_v17  ;;  %v787_v24 = vpop.f32.mrf.mxu1 }
  0xf0   : > { %v788_v28 = vadd.f32 %v787_v24, %v552_v22 }
  0xf1   : > { %v1225_v25 = vadd.f32 %v1224_v13, %v1130_v21  ;;  %v1264_v26 = vmul.f32 %v1130_v21, %v1130_v21 }
  0xf3   : > { %v1295_v27 = vadd.f32 %v1294_v16, %v1264_v26 }
  0xf4   : > { %v2583_v29 = vpop.f32.mrf.mxu3 }
  0xf6   : > { %v1064_v30 = vpop.f32.mrf.mxu2  ;;  %v555_v32 = vpop.f32.mrf.mxu0 }
  0xf7   : > { %v1131_v31 = vadd.f32 %v1064_v30, %v788_v28  ;;  %v790_v33 = vpop.f32.mrf.mxu1 }
  0xf8   : > { %v791_v38 = vadd.f32 %v790_v33, %v555_v32  ;;  %v828_v33 = vadd.f32 %v2583_v29, %v2535_v63 }
  0xf9   : > { %v2000_v34 = vpack.c.bf16 %v1131_v31, %v1130_v21  ;;  %v1226_v35 = vadd.f32 %v1225_v25, %v1131_v31  ;;  %v1265_v36 = vmul.f32 %v1131_v31, %v1131_v31 }
  0xfb   : > { %2060 = vst [vmem:[%s2544_s11 + $0x20] sm:$0xff] %v2000_v34   ;;  %v1296_v56 = vadd.f32 %v1295_v27, %v1265_v36 }
  0xfc   : > { %v830_v39 = vpop.f32.mrf.mxu3 }
  0xfd   : > { %v2587_v40 = vadd.f32 %v830_v39, %v2549_v14 }
  0xfe   : > { %v1067_v41 = vpop.f32.mrf.mxu2  ;;  %v557_v43 = vpop.f32.mrf.mxu0 }
  0xff   : > { %v1132_v42 = vadd.f32 %v1067_v41, %v791_v38  ;;  %v792_v44 = vpop.f32.mrf.mxu1 }
 0x100   : > { %v793_v49 = vadd.f32 %v792_v44, %v557_v43 }
 0x101   : > { %v1227_v45 = vadd.f32 %v1226_v35, %v1132_v42  ;;  %v1266_v47 = vmul.f32 %v1132_v42, %v1132_v42 }
 0x103   : > { %v1297_v48 = vadd.f32 %v1296_v56, %v1266_v47 }
 0x104   : > { %v2589_v50 = vpop.f32.mrf.mxu3 }
 0x106   : > { %v1069_v51 = vpop.f32.mrf.mxu2  ;;  %v560_v53 = vpop.f32.mrf.mxu0 }
 0x107   : > { %v1133_v52 = vadd.f32 %v1069_v51, %v793_v49  ;;  %v795_v54 = vpop.f32.mrf.mxu1  ;;  %v833_v49 = vadd.f32 %v2589_v50, %v2551_v23 }
 0x108   : > { %v796_v2 = vadd.f32 %v795_v54, %v560_v53 }
 0x109   : > { %v2005_v55 = vpack.c.bf16 %v1133_v52, %v1132_v42  ;;  %v2591_v57 = vadd.f32 %v1227_v45, %v1133_v52  ;;  %v1267_v14 = vmul.f32 %v1133_v52, %v1133_v52 }
 0x10b   : > { %2061 = vst [vmem:[%s2544_s11 + $0x28] sm:$0xff] %v2005_v55   ;;  %v2594_v58 = vadd.f32 %v1297_v48, %v1267_v14 }
 0x10c   : > { %v835_v59 = vpop.f32.mrf.mxu3 }
 0x10d   : > { %v2597_v60 = vadd.f32 %v835_v59, %v2562_v37 }
 0x10e   : > { %v1072_v62 = vpop.f32.mrf.mxu2  ;;  %v562_v0 = vpop.f32.mrf.mxu0 }
 0x10f   : > { %v797_v1 = vpop.f32.mrf.mxu1  ;;  %v2601_v6 = vadd.f32 %v1072_v62, %v796_v2 }
 0x110   : > { %v798_v3 = vadd.f32 %v797_v1, %v562_v0 }
 0x114   : > { %v2599_v4 = vpop.f32.mrf.mxu3 }
 0x116   : > { %v1074_v5 = vpop.f32.mrf.mxu2  ;;  %v565_v9 = vpop.f32.mrf.mxu0 }
 0x117   : > { %v2603_v8 = vadd.f32 %v1074_v5, %v798_v3  ;;  %v800_v10 = vpop.f32.mrf.mxu1 }
 0x118   : > { %v801_v17 = vadd.f32 %v800_v10, %v565_v9  ;;  %v1229_v10 = vadd.f32 %v2591_v57, %v2601_v6 }
 0x119   : > { %v2010_v11 = vpack.c.bf16 %v2603_v8, %v2601_v6  ;;  %v1269_v9 = vmul.f32 %v2603_v8, %v2603_v8 }
 0x11b   : > { %2062 = vst [vmem:[%s2544_s11 + $0x30] sm:$0xff] %v2010_v11  }
 0x11c   : > { %v840_v37 = vpop.f32.mrf.mxu3 }
 0x11d   : > { %v2609_v12 = vadd.f32 %v840_v37, %v2575_v61 }
 0x11e   : > { %v1077_v13 = vpop.f32.mrf.mxu2  ;;  %v567_v15 = vpop.f32.mrf.mxu0 }
 0x11f   : > { %v802_v16 = vpop.f32.mrf.mxu1  ;;  %v1136_v22 = vadd.f32 %v1077_v13, %v801_v17  ;;  %v838_v13 = vadd.f32 %v2599_v4, %v2564_v46 }
 0x120   : > { %v803_v18 = vadd.f32 %v802_v16, %v567_v15  ;;  %v1230_v15 = vadd.f32 %v1229_v10, %v2603_v8 }
 0x121   : > { %v1270_v16 = vmul.f32 %v1136_v22, %v1136_v22 }
 0x124   : > { %v2611_v20 = vpop.f32.mrf.mxu3 }
 0x126   : > { %v1079_v21 = vpop.f32.mrf.mxu2  ;;  %v570_v25 = vpop.f32.mrf.mxu0 }
 0x127   : > { %v2613_v24 = vadd.f32 %v1079_v21, %v803_v18  ;;  %v805_v26 = vpop.f32.mrf.mxu1 }
 0x128   : > { %v806_v32 = vadd.f32 %v805_v26, %v570_v25 }
 0x129   : > { %v2015_v27 = vpack.c.bf16 %v2613_v24, %v1136_v22 }
 0x12b   : > { %2063 = vst [vmem:[%s2544_s11 + $0x38] sm:$0xff] %v2015_v27  }
 0x12c   : > { %v1102_v28 = vpop.f32.mrf.mxu3 }
 0x12d   : > { %v2620_v36 = vadd.f32 %v1102_v28, %v2581_v19 }
 0x12e   : > { %v1082_v30 = vpop.f32.mrf.mxu2  ;;  %v572_v61 = vpop.f32.mrf.mxu0 }
 0x12f   : > { %v807_v31 = vpop.f32.mrf.mxu1  ;;  %v1138_v39 = vadd.f32 %v1082_v30, %v806_v32 }
 0x130   : > { %v808_v34 = vadd.f32 %v807_v31, %v572_v61 }
 0x131   : > { %v1272_v61 = vmul.f32 %v1138_v39, %v1138_v39 }
 0x134   : > { %v1104_v35 = vpop.f32.mrf.mxu3 }
 0x135   : > { %v2622_v38 = vadd.f32 %v1104_v35, %v828_v33 }
 0x136   : > { %v1084_v56 = vpop.f32.mrf.mxu2  ;;  %v575_v42 = vpop.f32.mrf.mxu0 }
 0x137   : > { %v2624_v41 = vadd.f32 %v1084_v56, %v808_v34  ;;  %v2040_v43 = vpack.c.bf16 %v2622_v38, %v2620_v36  ;;  %v810_v44 = vpop.f32.mrf.mxu1 }
 0x138   : > { %v811_v48 = vadd.f32 %v810_v44, %v575_v42 }
 0x139   : > { %v2020_v45 = vpack.c.bf16 %v2624_v41, %v1138_v39  ;;  %2068 = vst [vmem:[%s2544_s11 + $0x60] sm:$0xff] %v2040_v43   ;;  %v1273_v33 = vmul.f32 %v2624_v41, %v2624_v41 }
 0x13b   : > { %2064 = vst [vmem:[%s2544_s11 + $0x40] sm:$0xff] %v2020_v45  }
 0x13c   : > { %v1107_v63 = vpop.f32.mrf.mxu3 }
 0x13d   : > { %v2634_v53 = vadd.f32 %v1107_v63, %v2587_v40  ;;  %v1268_v40 = vmul.f32 %v2601_v6, %v2601_v6  ;;  %v1231_v6 = vadd.f32 %v1230_v15, %v1136_v22 }
 0x13e   : > { %v1087_v29 = vpop.f32.mrf.mxu2  ;;  %v577_v19 = vpop.f32.mrf.mxu0 }
 0x13f   : > { %v812_v47 = vpop.f32.mrf.mxu1  ;;  %v1140_v14 = vadd.f32 %v1087_v29, %v811_v48  ;;  %v1299_v37 = vadd.f32 %v2594_v58, %v1268_v40  ;;  %v1271_v58 = vmul.f32 %v2613_v24, %v2613_v24 }
 0x140   : > { %v813_v51 = vadd.f32 %v812_v47, %v577_v19 }
 0x141   : > { %v1300_v21 = vadd.f32 %v1299_v37, %v1269_v9  ;;  %v1274_v56 = vmul.f32 %v1140_v14, %v1140_v14 }
 0x143   : > { %v1301_v30 = vadd.f32 %v1300_v21, %v1270_v16 }
 0x144   : > { %v1109_v52 = vpop.f32.mrf.mxu3 }
 0x145   : > { %v2636_v55 = vadd.f32 %v1109_v52, %v833_v49  ;;  %v1302_v22 = vadd.f32 %v1301_v30, %v1271_v58 }
 0x146   : > { %v1089_v54 = vpop.f32.mrf.mxu2  ;;  %v580_v62 = vpop.f32.mrf.mxu0 }
 0x147   : > { %v1141_v59 = vadd.f32 %v1089_v54, %v813_v51  ;;  %v2045_v0 = vpack.c.bf16 %v2636_v55, %v2634_v53  ;;  %v815_v1 = vpop.f32.mrf.mxu1  ;;  %v1303_v34 = vadd.f32 %v1302_v22, %v1272_v61  ;;  %v843_v54 = vadd.f32 %v2611_v20, %v2577_v7 }
 0x148   : > { %v816_v11 = vadd.f32 %v815_v1, %v580_v62 }
 0x149   : > { %v2025_v2 = vpack.c.bf16 %v1141_v59, %v1140_v14  ;;  %2069 = vst [vmem:[%s2544_s11 + $0x68] sm:$0xff] %v2045_v0   ;;  %v1275_v63 = vmul.f32 %v1141_v59, %v1141_v59 }
 0x14b   : > { %2065 = vst [vmem:[%s2544_s11 + $0x48] sm:$0xff] %v2025_v2  }
 0x14c   : > { %v1112_v3 = vpop.f32.mrf.mxu3 }
 0x14d   : > { %v2653_v25 = vadd.f32 %v1112_v3, %v2597_v60  ;;  %v1232_v60 = vadd.f32 %v1231_v6, %v2613_v24  ;;  %v1304_v24 = vadd.f32 %v1303_v34, %v1273_v33 }
 0x14e   : > { %v1092_v23 = vpop.f32.mrf.mxu2  ;;  %v582_v50 = vpop.f32.mrf.mxu0 }
 0x14f   : > { %v817_v5 = vpop.f32.mrf.mxu1  ;;  %v1142_v46 = vadd.f32 %v1092_v23, %v816_v11  ;;  %v1233_v32 = vadd.f32 %v1232_v60, %v1138_v39  ;;  %v1305_v29 = vadd.f32 %v1304_v24, %v1274_v56 }
 0x150   : > { %v818_v17 = vadd.f32 %v817_v5, %v582_v50 }
 0x151   : > { %v1234_v35 = vadd.f32 %v1233_v32, %v2624_v41  ;;  %v1276_v39 = vmul.f32 %v1142_v46, %v1142_v46  ;;  %v1306_v41 = vadd.f32 %v1305_v29, %v1275_v63 }
 0x153   : > { %v1235_v45 = vadd.f32 %v1234_v35, %v1140_v14  ;;  %v1307_v14 = vadd.f32 %v1306_v41, %v1276_v39 }
 0x154   : > { %v1114_v18 = vpop.f32.mrf.mxu3 }
 0x155   : > { %v2655_v57 = vadd.f32 %v1114_v18, %v838_v13  ;;  %v1236_v19 = vadd.f32 %v1235_v45, %v1141_v59 }
 0x156   : > { %v1094_v26 = vpop.f32.mrf.mxu2  ;;  %v585_v27 = vpop.f32.mrf.mxu0 }
 0x157   : > { %v1143_v4 = vadd.f32 %v1094_v26, %v818_v17  ;;  %v2050_v8 = vpack.c.bf16 %v2655_v57, %v2653_v25  ;;  %v820_v28 = vpop.f32.mrf.mxu1  ;;  %v1237_v51 = vadd.f32 %v1236_v19, %v1142_v46 }
 0x158   : > { %v821_v42 = vadd.f32 %v820_v28, %v585_v27 }
 0x159   : > { %v2030_v31 = vpack.c.bf16 %v1143_v4, %v1142_v46  ;;  %2070 = vst [vmem:[%s2544_s11 + $0x70] sm:$0xff] %v2050_v8   ;;  %v1277_v52 = vmul.f32 %v1143_v4, %v1143_v4  ;;  %v1238_v62 = vadd.f32 %v1237_v51, %v1143_v4 }
 0x15b   : > { %2066 = vst [vmem:[%s2544_s11 + $0x50] sm:$0xff] %v2030_v31   ;;  %v1308_v50 = vadd.f32 %v1307_v14, %v1277_v52 }
 0x15c   : > { %v1117_v43 = vpop.f32.mrf.mxu3 }
 0x15d   : > { %v1152_v59 = vadd.f32 %v1117_v43, %v2609_v12  ;;  %v1280_v12 = vmul.f32 %v2620_v36, %v2620_v36 }
 0x15e   : > { %v1097_v44 = vpop.f32.mrf.mxu2  ;;  %v587_v48 = vpop.f32.mrf.mxu0 }
 0x15f   : > { %v1144_v47 = vadd.f32 %v1097_v44, %v821_v42  ;;  %v822_v49 = vpop.f32.mrf.mxu1 }
 0x160   : > { %v823_v1 = vadd.f32 %v822_v49, %v587_v48 }
 0x161   : > { %v1278_v0 = vmul.f32 %v1144_v47, %v1144_v47  ;;  %v1239_v40 = vadd.f32 %v1238_v62, %v1144_v47 }
 0x163   : > { %v1309_v7 = vadd.f32 %v1308_v50, %v1278_v0 }
 0x164   : > { %v1119_v2 = vpop.f32.mrf.mxu3 }
 0x165   : > { %v1153_v23 = vadd.f32 %v1119_v2, %v843_v54 }
 0x166   : > { %v1099_v3 = vpop.f32.mrf.mxu2 }
 0x167   : > { %v1145_v5 = vadd.f32 %v1099_v3, %v823_v1  ;;  %v2055_v9 = vpack.c.bf16 %v1153_v23, %v1152_v59 }
 0x169   : > { %v2035_v20 = vpack.c.bf16 %v1145_v5, %v1144_v47  ;;  %v1240_v10 = vadd.f32 %v1239_v40, %v1145_v5  ;;  %v1279_v11 = vmul.f32 %v1145_v5, %v1145_v5  ;;  %2071 = vst [vmem:[%s2544_s11 + $0x78] sm:$0xff] %v2055_v9  }
 0x16b   : > { %2067 = vst [vmem:[%s2544_s11 + $0x58] sm:$0xff] %v2035_v20   ;;  %v1241_v37 = vadd.f32 %v1240_v10, %v2620_v36  ;;  %v1310_v13 = vadd.f32 %v1309_v7, %v1279_v11 }
 0x16c   : > { %2192 = shalt.err (!%p2189_p6)
}
 0x16d   : > { %s2321_s11 = smov 64   ;;  %s2322_s23 = smov 4   ;;  %v1281_v36 = vmul.f32 %v2622_v38, %v2622_v38  ;;  %v1242_v15 = vadd.f32 %v1241_v37, %v2622_v38  ;;  %v1311_v16 = vadd.f32 %v1310_v13, %v1280_v12  ;;  %v1282_v17 = vmul.f32 %v2634_v53, %v2634_v53 }
 0x16e   : > { %2082 = dma.vmem_to_hbm [thread:$0]  (%p2401_p3), %s2676_s27, 2048, %s2678_s9, %s1327_s10, %s2321_s11, %s2321_s11, %s2322_s23   ;;  %v1283_v26 = vmul.f32 %v2636_v55, %v2636_v55  ;;  %v1284_v46 = vmul.f32 %v2653_v25, %v2653_v25  ;;  %v1285_v8 = vmul.f32 %v2655_v57, %v2655_v57  ;;  %v1286_v28 = vmul.f32 %v1152_v59, %v1152_v59 }
 0x16f   : > { %v1243_v18 = vadd.f32 %v1242_v15, %v2634_v53  ;;  %v1312_v21 = vadd.f32 %v1311_v16, %v1281_v36  ;;  %s1918_s23 = sshll.u32 %s2307_s19, 3  ;;  %s2806_s13 = sadd.s32 4294967295, %s2319_s22  }
 0x170   : > { %s1369_s27 = sadd.s32 %s2303_s18, %s1918_s23  ;;  %s2721_s14 = sand.u32 1, %s2806_s13  }
 0x171   : > { %v1313_v6 = vadd.f32 %v1312_v21, %v1282_v17  ;;  %v1244_v58 = vadd.f32 %v1243_v18, %v2636_v55  ;;  %v1287_v55 = vmul.f32 %v1153_v23, %v1153_v23  ;;  %s1370_s12 = scalar_lea.hbm %s2800_s3, %s1369_s27  ;;  %s1387_s19 = scalar_lea.hbm %s2801_s4, %s1369_s27 }
 0x172   : > { %s268_s6 = scalar_lea.vmem [#allocation4], %s2533_s24  ;;  %s2729_s8 = sshll.u32 %s1370_s12, 4  ;;  %s1375_s8 = int_to_ptr.hbm [resolvable:$true] %s2729_s8 }
 0x173   : > { %v1245_v38 = vadd.f32 %v1244_v58, %v2653_v25  ;;  %v1314_v4 = vadd.f32 %v1313_v6, %v1283_v26  ;;  %s2727_s18 = sshll.u32 %s268_s6, 4  ;;  %s274_s11 = scalar_lea.vmem [#allocation6], %s2533_s24  ;;  %s1373_s18 = int_to_ptr.vmem [resolvable:$true] %s2727_s18 }
 0x174   : > { %s2732_s23 = sshll.u32 %s274_s11, 4  ;;  %s2734_s9 = sshll.u32 %s1387_s19, 4  ;;  %s1390_s23 = int_to_ptr.vmem [resolvable:$true] %s2732_s23  ;;  %s1392_s9 = int_to_ptr.hbm [resolvable:$true] %s2734_s9 }
 0x175   : > { %v1246_v53 = vadd.f32 %v1245_v38, %v2655_v57  ;;  %v1315_v27 = vadd.f32 %v1314_v4, %v1284_v46  ;;  %s1332_s27 = scalar_lea.sflag [#allocation5], %s2721_s14  ;;  %s2207_s10 = sshra.s32 %s1375_s8, 4  ;;  %s2208_s10 = int_to_ptr.hbm [resolvable:$true] %s2207_s10 }
 0x176   : > { %s2209_s12 = scalar_lea.hbm %s2208_s10, 1  ;;  %s2213_s30 = scalar_lea.hbm %s2800_s3, 16 }
 0x177   : > { %v1247_v30 = vadd.f32 %v1246_v53, %v1152_v59  ;;  %v1316_v60 = vadd.f32 %v1315_v27, %v1285_v8  ;;  %p2210_p7 = scmp.ne.s32.totalorder %s2208_s10, %s2209_s12  ;;  %p2214_p11 = scmp.lt.s32.totalorder %s2208_s10, %s2800_s3 }
 0x178   : > { %p2215_p12 = scmp.lt.s32.totalorder %s2213_s30, %s2209_s12 }
 0x179   : > { %v1248_v61 = vadd.f32 %v1247_v30, %v1153_v23  ;;  %v1317_v31 = vadd.f32 %v1316_v60, %v1286_v28  ;;  %p2211_p9 = pnand %p2210_p7, %p2401_p3 }
 0x17a   : > { %p2216_p13 = por %p2215_p12, %p2214_p11 }
 0x17b   : > { %v1249_v22 = vrot.slane %v1248_v61, 4  ;;  %v1318_v32 = vadd.f32 %v1317_v31, %v1287_v55  ;;  %p2212_p10 = pneg %p2211_p9 }
 0x17d   : > { %v1250_v25 = vadd.f32 %v1249_v22, %v1248_v61  ;;  %v1319_v33 = vrot.slane %v1318_v32, 4  ;;  %p2217_p0 = pnand %p2216_p13, %p2212_p10 }
 0x17f   : > { %v1251_v34 = vrot.slane %v1250_v25, 2  ;;  %v1320_v35 = vadd.f32 %v1319_v33, %v1318_v32 }
 0x181   : > { %v1321_v57 = vrot.slane %v1320_v35, 2  ;;  %v1252_v56 = vadd.f32 %v1251_v34, %v1250_v25 }
 0x183   : > { %v1253_v42 = vrot.slane %v1252_v56, 1  ;;  %v1322_v43 = vadd.f32 %v1321_v57, %v1320_v35 }
 0x185   : > { %v1254_v44 = vadd.f32 %v1253_v42, %v1252_v56  ;;  %v1323_v24 = vrot.slane %v1322_v43, 1 }
 0x187   : > { %1255 = vst [vmem:[%s268_s6] sm:$0x1] %v1254_v44  ;;  %v1324_v45 = vadd.f32 %v1323_v24, %v1322_v43 }
 0x188   : > { %2220 = shalt.err (!%p2217_p0)
}
 0x189   : > { %2083 = dma.vmem_to_hbm [thread:$0]  (%p2401_p3), %s1373_s18, 16, %s1375_s8, %s1332_s27   ;;  %1325 = vst [vmem:[%s274_s11] sm:$0x1] %v1324_v45 }
 0x18a   : > { %s2235_s14 = sshra.s32 %s1392_s9, 4  ;;  %s2241_s12 = scalar_lea.hbm %s2801_s4, 16  ;;  %s2236_s14 = int_to_ptr.hbm [resolvable:$true] %s2235_s14 }
 0x18b   : > { %s2237_s6 = scalar_lea.hbm %s2236_s14, 1  ;;  %p2242_p5 = scmp.lt.s32.totalorder %s2236_s14, %s2801_s4 }
 0x18c   : > { %p2238_p1 = scmp.ne.s32.totalorder %s2236_s14, %s2237_s6  ;;  %p2243_p6 = scmp.lt.s32.totalorder %s2241_s12, %s2237_s6 }
 0x18e   : > { %p2239_p2 = pnand %p2238_p1, %p2401_p3  ;;  %p2244_p7 = por %p2243_p6, %p2242_p5 }
 0x190   : > { %p2240_p4 = pneg %p2239_p2 }
 0x192   : > { %p2245_p9 = pnand %p2244_p7, %p2240_p4 }
 0x194   : > { %2248 = shalt.err (!%p2245_p9)
}
 0x195   : > { %2084 = dma.vmem_to_hbm [thread:$0]  (%p2401_p3), %s1390_s23, 16, %s1392_s9, %s1332_s27  }
 0x196 PF: > { %p2098_p10 = scmp.ge.s32.totalorder %s2319_s22, 2  ;;  %s1403_s18 = sand.u32 1, %s2291_s15  }
 0x197   : > { %s1404_s8 = scalar_lea.sflag [#allocation3], %s1403_s18 }
 0x198   : > { %p2089_p11 = pnand %p2098_p10, %p2412_p8 }
 0x19a   : > { %p2090_p12 = pneg %p2089_p11 }
 0x19c   : > { %2282 = dma.done.wait (%p2090_p12), %s1404_s8, 2048  }
 0x19d   : > { %2284 = vsyncadd (%p2090_p12), %s1404_s8, 4294965248  ;;  %s2807_s11 = sadd.s32 4294967294, %s2319_s22  }
 0x19e   : > { %s1413_s28 = sand.u32 1, %s2807_s11  }
 0x19f   : > { %s1414_s5 = scalar_lea.sflag [#allocation5], %s1413_s28 }
 0x1a0   : > { %2286 = dma.done.wait (%p2090_p12), %s1414_s5, 32  }
 0x1a1   : > { %2288 = vsyncadd (%p2090_p12), %s1414_s5, 4294967264  ;;  %s21_s22 = sadd.s32 1, %s2319_s22   ;;  %s2808_s15 = smov %s2295_s16 }
 0x1a2   : > { %p18_p3 = scmp.ge.s32.totalorder %s21_s22, 18   ;;  %s2809_s16 = smov %s2299_s17 }
 0x1a3   : > { %s2810_s17 = smov %s2421_s7  ;;  %s2811_s18 = smov %s2311_s20 }
 0x1a4   : > { %s2812_s19 = smov %s2315_s21  ;;  %s2813_s20 = smov %s2816_s25 }
 0x1a5   : > { %s2814_s21 = smov %s2820_s26  ;;  %20 = sbr.rel (!%p18_p3) target bundleno = 7 (0x7), region = 103 }
 0x1aa   :  { %1428 = vsyncpa [#allocation3], 1 }
 0x1ab   :  { %1430 = vsyncpa [#allocation3 + $0x1], 1 }
 0x1ac   :  { %1431 = vsyncpa [#allocation5], 1 }
 0x1ad   :  { %1433 = vsyncpa [#allocation5 + $0x1], 1 }

</bundles_post_ra>
